<compile_context>
chip_gen: v7x
topology: tpu7x:2x2x1
jax: 0.10.0
libtpu: 0.0.40
codegen_flags: <defaults>
</compile_context>

<pallas_src>
import functools

import jax
import jax.numpy as jnp
from jax.experimental import pallas as pl
from jax.experimental.pallas import tpu as pltpu

H1, H2 = 400, 300            # true hidden sizes (PyTorch Critic: 400 / 300)
H1P, H2P = 512, 384          # lane-padded sizes (multiples of 128); "shifted" layout:
                             #   lane 0          = row-sum column (free LN mean via MXU)
                             #   lanes 1..H      = real hidden units
                             #   lanes H+1..HP-1 = zero padding
LEAKY_SLOPE = 0.01           # PyTorch F.leaky_relu default
LN_EPS = 1e-5                # PyTorch nn.LayerNorm default
_MIN_TILE = 16               # bf16 sublane tile


def _round_up(x, m):
    return (x + m - 1) // m * m


def _cdiv(a, b):
    return -(-a // b)


def _leaky_relu(x):
    return jnp.where(x >= 0, x, LEAKY_SLOPE * x)


def _layer_norm_shifted(h, gamma, beta, mask, true_n):
    """LayerNorm over the 'shifted' layout: lane 0 of h holds sum(real lanes)
    (produced for free by an extra matmul column), real features live in lanes
    [1, true_n], remaining lanes are zero.  gamma/beta/mask are zero outside the
    real lanes, so padding lanes come out exactly zero."""
    inv_n = 1.0 / float(true_n)
    mean = h[:, 0:1] * inv_n                                   # free mean, no XLU reduce
    centered = h - mean
    cm = centered * mask                                       # keep only the real lanes
    var = jnp.sum(cm * cm, axis=-1, keepdims=True) * inv_n     # single XLU reduce
    inv = jax.lax.rsqrt(var + LN_EPS)
    return centered * inv * gamma + beta


def _critic_kernel(layer_norm, mxu_head, x_ref, u_ref, w1x_ref, w1u_ref, w2_ref,
                   w3m_ref, vec_ref, out_ref):
    # Packed f32 slab [16, H1P] (see pack_params for the row layout).
    V = vec_ref[...]
    b1, g1, be1, m1 = V[0:1, :], V[1:2, :], V[2:3, :], V[3:4, :]
    b2, g2, be2, m2 = (V[4:5, :H2P], V[5:6, :H2P], V[6:7, :H2P], V[7:8, :H2P])
    w3_row = V[8:9, :H2P]
    b3 = V[9:10, 0:1]

    # Layer 1: split-K matmul over (x | u) -- no HBM concat of xu needed.
    h = (jnp.dot(x_ref[...], w1x_ref[...], preferred_element_type=jnp.float32)
         + jnp.dot(u_ref[...], w1u_ref[...], preferred_element_type=jnp.float32)
         + b1)
    if layer_norm:
        h = _layer_norm_shifted(h, g1, be1, m1, H1)
    h = _leaky_relu(h)

    # Layer 2.
    h = jnp.dot(h.astype(jnp.bfloat16), w2_ref[...],
                preferred_element_type=jnp.float32) + b2
    if layer_norm:
        h = _layer_norm_shifted(h, g2, be2, m2, H2)
    h = _leaky_relu(h)

    # Layer 3 (N=1 head).
    if mxu_head:
        # LN regime is XLU-bound on v6e/v7x -> do the reduce on the MXU (col 0 = q).
        qcol = jnp.dot(h.astype(jnp.bfloat16), w3m_ref[...],
                       preferred_element_type=jnp.float32)
        q = qcol[:, 0:1] + b3                                   # [TB, 1]
    else:
        q = jnp.sum(h * w3_row, axis=-1, keepdims=True) + b3    # [TB, 1]

    # Lane-dense [1, TB] output row (small XLU relayout; lane-major stores).
    out_ref[...] = q.reshape(out_ref.shape)


def init_params(key, state_dim, action_dim):
    """PyTorch nn.Linear default init (U[-1/sqrt(fan_in), 1/sqrt(fan_in)])."""
    d_in = state_dim + action_dim

    def linear(k, fin, fout):
        kw, kb = jax.random.split(k)
        bound = 1.0 / jnp.sqrt(jnp.float32(fin))
        w = jax.random.uniform(kw, (fin, fout), jnp.float32, -bound, bound)
        b = jax.random.uniform(kb, (fout,), jnp.float32, -bound, bound)
        return w, b

    k1, k2, k3 = jax.random.split(key, 3)
    w1, b1 = linear(k1, d_in, H1)
    w2, b2 = linear(k2, H1, H2)
    w3, b3 = linear(k3, H2, 1)
    return dict(
        w1=w1, b1=b1, g1=jnp.ones((H1,), jnp.float32), be1=jnp.zeros((H1,), jnp.float32),
        w2=w2, b2=b2, g2=jnp.ones((H2,), jnp.float32), be2=jnp.zeros((H2,), jnp.float32),
        w3=w3, b3=b3,
    )


def pack_params(p, state_dim, action_dim):
    """One-time packing: bf16 weights in the 'shifted' lane layout (lane 0 = sum
    column), plus one [16, H1P] f32 slab holding all small per-layer vectors."""
    f32 = jnp.float32
    bf_round = lambda a: a.astype(jnp.bfloat16).astype(f32)

    def shift_cols(w, n_pad):
        # [K, N] -> [K, n_pad]: col 0 = row-sum over true cols, cols 1..N = w, rest 0.
        s = jnp.sum(w, axis=1, keepdims=True)
        out = jnp.concatenate([s, w], axis=1)
        return jnp.pad(out, ((0, 0), (0, n_pad - out.shape[1])))

    def shift_row(v, lead):
        # [N] -> [1, H1P]: lane 0 = lead, lanes 1..N = v, rest 0.
        row = jnp.concatenate([jnp.full((1,), lead, f32), v.astype(f32)])
        return jnp.pad(row, (0, H1P - row.shape[0])).reshape(1, H1P)

    # Layer 1 split by (state | action), bf16, lane-shifted + sum column.
    w1 = bf_round(p["w1"])                                       # [S+A, H1]
    w1x = shift_cols(w1[:state_dim], H1P).astype(jnp.bfloat16)   # [S, H1P]
    w1u = shift_cols(w1[state_dim:], H1P).astype(jnp.bfloat16)   # [A, H1P]

    # Layer 2: shift output cols (sum col at lane 0) AND input rows (row 0 <- 0).
    w2 = shift_cols(bf_round(p["w2"]), H2P)                      # [H1, H2P]
    w2 = jnp.concatenate([jnp.zeros((1, H2P), f32), w2], axis=0)
    w2 = jnp.pad(w2, ((0, H1P - w2.shape[0]), (0, 0))).astype(jnp.bfloat16)  # [H1P,H2P]

    # Head: w3 as a shifted row (VPU/XLU path) and as an [H2P,128] MXU matrix.
    w3v = p["w3"].reshape(-1).astype(f32)                        # [H2]
    w3m = jnp.zeros((H2P, 128), f32).at[1:H2 + 1, 0].set(w3v).astype(jnp.bfloat16)

    vecs = jnp.concatenate([
        shift_row(p["b1"], jnp.sum(p["b1"])),                    # 0: b1   (lane0 = sum)
        shift_row(p["g1"], 0.0),                                 # 1: gamma1
        shift_row(p["be1"], 0.0),                                # 2: beta1
        shift_row(jnp.ones((H1,), f32), 0.0),                    # 3: mask1
        shift_row(p["b2"], jnp.sum(p["b2"])),                    # 4: b2   (lane0 = sum)
        shift_row(p["g2"], 0.0),                                 # 5: gamma2
        shift_row(p["be2"], 0.0),                                # 6: beta2
        shift_row(jnp.ones((H2,), f32), 0.0),                    # 7: mask2
        shift_row(w3v, 0.0),                                     # 8: w3 row
        jnp.pad(p["b3"].astype(f32), (0, H1P - 1)).reshape(1, H1P),  # 9: b3 at lane 0
        jnp.zeros((6, H1P), f32),                                # 10..15: padding rows
    ], axis=0)                                                   # [16, H1P]

    return dict(w1x=w1x, w1u=w1u, w2=w2, w3m=w3m, vecs=vecs)


def _choose_tiles(batch, block_b):
    n = max(1, _cdiv(batch, block_b))
    if batch >= 2 * _MIN_TILE:
        n = max(n, 2)          # >=2 grid steps so v7x megacore can split the batch
    tb = _round_up(_cdiv(batch, n), _MIN_TILE)   # even split, bf16 sublane-aligned
    return _cdiv(batch, tb), tb


def critic_forward(x, u, packed, *, layer_norm=True, mxu_head=None, block_b=512):
    """Returns q of shape [B, 1]."""
    if mxu_head is None:
        # With LN on, XLU is the binding slot on v6e/v7x -> MXU head.  Without LN
        # keep the cheap VPU/XLU reduce.
        # TODO(synk): on MXU-bound v5e, prefer mxu_head=False even with layer_norm.
        mxu_head = layer_norm

    x = x.astype(jnp.bfloat16)
    u = u.astype(jnp.bfloat16)
    B, S = x.shape
    A = u.shape[1]

    n_tiles, TB = _choose_tiles(B, block_b)
    Bp = n_tiles * TB
    if Bp != B:
        x = jnp.pad(x, ((0, Bp - B), (0, 0)))
        u = jnp.pad(u, ((0, Bp - B), (0, 0)))

    w1x, w1u, w2, w3m, vecs = (packed["w1x"], packed["w1u"], packed["w2"],
                               packed["w3m"], packed["vecs"])
    kernel = functools.partial(_critic_kernel, layer_norm, mxu_head)

    flops = 2 * Bp * ((S + A) * H1P + H1P * H2P + (H2P * 128 if mxu_head else H2P))
    bytes_accessed = ((x.size + u.size) * 2
                      + (w1x.size + w1u.size + w2.size + w3m.size) * 2
                      + vecs.size * 4 + Bp * 4)
    cost = pl.CostEstimate(flops=flops,
                           transcendentals=(2 * Bp if layer_norm else 0),
                           bytes_accessed=bytes_accessed)

    out = pl.pallas_call(
        kernel,
        out_shape=jax.ShapeDtypeStruct((n_tiles, 1, TB), jnp.float32),
        grid=(n_tiles,),
        in_specs=[
            pl.BlockSpec((TB, S), lambda i: (i, 0)),       # x tile (bf16)
            pl.BlockSpec((TB, A), lambda i: (i, 0)),       # u tile (bf16)
            pl.BlockSpec((S, H1P), lambda i: (0, 0)),      # w1 state part, VMEM-resident
            pl.BlockSpec((A, H1P), lambda i: (0, 0)),      # w1 action part, VMEM-resident
            pl.BlockSpec((H1P, H2P), lambda i: (0, 0)),    # w2, VMEM-resident
            pl.BlockSpec((H2P, 128), lambda i: (0, 0)),    # w3 MXU matrix, VMEM-resident
            pl.BlockSpec((16, H1P), lambda i: (0, 0)),     # packed vectors, VMEM-resident
        ],
        out_specs=pl.BlockSpec((1, 1, TB), lambda i: (i, 0, 0)),   # lane-dense q row
        compiler_params=pltpu.CompilerParams(
            dimension_semantics=("parallel",)),
        cost_estimate=cost,
    )(x, u, w1x, w1u, w2, w3m, vecs)

    return out.reshape(Bp)[:B].reshape(B, 1)


def _reference_forward(x, u, p, layer_norm=True, mxu_head=None):
    """Pure-JAX reference mirroring the kernel's bf16 quantization choices."""
    if mxu_head is None:
        mxu_head = layer_norm
    bf = lambda a: a.astype(jnp.bfloat16).astype(jnp.float32)

    def ln(h, g, b):
        mean = jnp.mean(h, axis=-1, keepdims=True)
        var = jnp.mean(jnp.square(h - mean), axis=-1, keepdims=True)
        return (h - mean) * jax.lax.rsqrt(var + LN_EPS) * g + b

    xu = jnp.concatenate([x, u], axis=1)
    h = bf(xu) @ bf(p["w1"]) + p["b1"]
    if layer_norm:
        h = ln(h, p["g1"], p["be1"])
    h = _leaky_relu(h)
    h = bf(h) @ bf(p["w2"]) + p["b2"]
    if layer_norm:
        h = ln(h, p["g2"], p["be2"])
    h = _leaky_relu(h)
    if mxu_head:
        return bf(h) @ bf(p["w3"]) + p["b3"]
    return h @ p["w3"] + p["b3"]


if __name__ == "__main__":
    # TODO(synk): update()/Adam/MSE loss/soft target update and save/load/get_params/
    # set_params/get_grads are training-loop & I/O logic with no kernel-level
    # equivalent; only forward() is implemented here.
    state_dim, action_dim, batch = 16, 4, 8

    key = jax.random.PRNGKey(0)
    kx, ku, kp, kx2, ku2 = jax.random.split(key, 5)
    x = jax.random.normal(kx, (batch, state_dim), jnp.float32)
    u = jax.random.normal(ku, (batch, action_dim), jnp.float32)

    params = init_params(kp, state_dim, action_dim)
    packed = pack_params(params, state_dim, action_dim)

    # layer_norm=True path (args.layer_norm = True): MXU head.
    q = critic_forward(x, u, packed, layer_norm=True)
    jax.block_until_ready(q)
    r = _reference_forward(x, u, params, layer_norm=True)
    assert q.shape == (batch, 1)
    assert jnp.allclose(q, r, atol=3e-3, rtol=3e-3), float(jnp.max(jnp.abs(q - r)))

    # layer_norm=False path: VPU/XLU reduction head.
    q2 = critic_forward(x, u, packed, layer_norm=False)
    jax.block_until_ready(q2)
    r2 = _reference_forward(x, u, params, layer_norm=False)
    assert jnp.allclose(q2, r2, atol=3e-3, rtol=3e-3), float(jnp.max(jnp.abs(q2 - r2)))

    # Multi-tile grid (exercises the >=2-step megacore path + uneven batch padding).
    xb = jax.random.normal(kx2, (40, state_dim), jnp.float32)
    ub = jax.random.normal(ku2, (40, action_dim), jnp.float32)
    q3 = critic_forward(xb, ub, packed, layer_norm=True)
    jax.block_until_ready(q3)
    r3 = _reference_forward(xb, ub, params, layer_norm=True)
    assert q3.shape == (40, 1)
    assert jnp.allclose(q3, r3, atol=3e-3, rtol=3e-3), float(jnp.max(jnp.abs(q3 - r3)))

    print("KERNEL_OK")
</pallas_src>

<mosaic_0001>
module attributes {stable_mosaic.version = 11 : i64} {
  func.func @_critic_kernel(%arg0: i32, %arg1: memref<16x16xbf16, #tpu.memory_space<vmem>>, %arg2: memref<16x4xbf16, #tpu.memory_space<vmem>>, %arg3: memref<16x512xbf16, #tpu.memory_space<vmem>>, %arg4: memref<4x512xbf16, #tpu.memory_space<vmem>>, %arg5: memref<512x384xbf16, #tpu.memory_space<vmem>>, %arg6: memref<384x128xbf16, #tpu.memory_space<vmem>>, %arg7: memref<16x512xf32, #tpu.memory_space<vmem>>, %arg8: memref<1x1x16xf32, #tpu.memory_space<vmem>>) attributes {dimension_semantics = [#tpu.dimension_semantics<parallel>], iteration_bounds = array<i64: 1>, scalar_prefetch = 0 : i64, scratch_operands = 0 : i64, tpu.core_type = #tpu.core_type<tc>, window_params = [{transform_indices = @transform_0, window_bounds = array<i64: 16, 16>}, {transform_indices = @transform_1, window_bounds = array<i64: 16, 4>}, {pipeline_mode = #tpu.pipeline_mode<synchronous>, transform_indices = @transform_2, window_bounds = array<i64: 16, 512>}, {pipeline_mode = #tpu.pipeline_mode<synchronous>, transform_indices = @transform_3, window_bounds = array<i64: 4, 512>}, {pipeline_mode = #tpu.pipeline_mode<synchronous>, transform_indices = @transform_4, window_bounds = array<i64: 512, 384>}, {pipeline_mode = #tpu.pipeline_mode<synchronous>, transform_indices = @transform_5, window_bounds = array<i64: 384, 128>}, {pipeline_mode = #tpu.pipeline_mode<synchronous>, transform_indices = @transform_6, window_bounds = array<i64: 16, 512>}, {transform_indices = @transform_7, window_bounds = array<i64: 1, 1, 16>}]} {
    %c0 = arith.constant 0 : index
    %c0_0 = arith.constant 0 : index
    %0 = vector.load %arg7[%c0, %c0_0] : memref<16x512xf32, #tpu.memory_space<vmem>>, vector<16x512xf32>
    %1 = vector.extract_strided_slice %0 {offsets = [0, 0], sizes = [1, 512], strides = [1, 1]} : vector<16x512xf32> to vector<1x512xf32>
    %2 = vector.extract_strided_slice %0 {offsets = [1, 0], sizes = [1, 512], strides = [1, 1]} : vector<16x512xf32> to vector<1x512xf32>
    %3 = vector.extract_strided_slice %0 {offsets = [2, 0], sizes = [1, 512], strides = [1, 1]} : vector<16x512xf32> to vector<1x512xf32>
    %4 = vector.extract_strided_slice %0 {offsets = [3, 0], sizes = [1, 512], strides = [1, 1]} : vector<16x512xf32> to vector<1x512xf32>
    %5 = vector.extract_strided_slice %0 {offsets = [4, 0], sizes = [1, 384], strides = [1, 1]} : vector<16x512xf32> to vector<1x384xf32>
    %6 = vector.extract_strided_slice %0 {offsets = [5, 0], sizes = [1, 384], strides = [1, 1]} : vector<16x512xf32> to vector<1x384xf32>
    %7 = vector.extract_strided_slice %0 {offsets = [6, 0], sizes = [1, 384], strides = [1, 1]} : vector<16x512xf32> to vector<1x384xf32>
    %8 = vector.extract_strided_slice %0 {offsets = [7, 0], sizes = [1, 384], strides = [1, 1]} : vector<16x512xf32> to vector<1x384xf32>
    %9 = vector.extract_strided_slice %0 {offsets = [9, 0], sizes = [1, 1], strides = [1, 1]} : vector<16x512xf32> to vector<1x1xf32>
    %c0_1 = arith.constant 0 : index
    %c0_2 = arith.constant 0 : index
    %10 = vector.load %arg1[%c0_1, %c0_2] : memref<16x16xbf16, #tpu.memory_space<vmem>>, vector<16x16xbf16>
    %c0_3 = arith.constant 0 : index
    %c0_4 = arith.constant 0 : index
    %11 = vector.load %arg3[%c0_3, %c0_4] : memref<16x512xbf16, #tpu.memory_space<vmem>>, vector<16x512xbf16>
    %cst = arith.constant dense<0.000000e+00> : vector<16x512xf32>
    %12 = tpu.matmul %10, %11, %cst {dimension_numbers = #tpu.dot_dimension_numbers<[1], [0], [0], [1], [0, 0, 1, 1], [], []>} : vector<16x16xbf16>, vector<16x512xbf16>, vector<16x512xf32> -> vector<16x512xf32>
    %c0_5 = arith.constant 0 : index
    %c0_6 = arith.constant 0 : index
    %13 = vector.load %arg2[%c0_5, %c0_6] : memref<16x4xbf16, #tpu.memory_space<vmem>>, vector<16x4xbf16>
    %c0_7 = arith.constant 0 : index
    %c0_8 = arith.constant 0 : index
    %14 = vector.load %arg4[%c0_7, %c0_8] : memref<4x512xbf16, #tpu.memory_space<vmem>>, vector<4x512xbf16>
    %cst_9 = arith.constant dense<0.000000e+00> : vector<16x512xf32>
    %15 = tpu.matmul %13, %14, %cst_9 {dimension_numbers = #tpu.dot_dimension_numbers<[1], [0], [0], [1], [0, 0, 1, 1], [], []>} : vector<16x4xbf16>, vector<4x512xbf16>, vector<16x512xf32> -> vector<16x512xf32>
    %16 = arith.addf %12, %15 : vector<16x512xf32>
    %17 = vector.broadcast %1 : vector<1x512xf32> to vector<16x512xf32>
    %18 = arith.addf %16, %17 : vector<16x512xf32>
    %19 = vector.extract_strided_slice %18 {offsets = [0, 0], sizes = [16, 1], strides = [1, 1]} : vector<16x512xf32> to vector<16x1xf32>
    %cst_10 = arith.constant 2.500000e-03 : f32
    %20 = vector.broadcast %cst_10 : f32 to vector<16x1xf32>
    %21 = arith.mulf %19, %20 : vector<16x1xf32>
    %22 = vector.broadcast %21 : vector<16x1xf32> to vector<16x512xf32>
    %23 = arith.subf %18, %22 : vector<16x512xf32>
    %24 = vector.broadcast %4 : vector<1x512xf32> to vector<16x512xf32>
    %25 = arith.mulf %23, %24 : vector<16x512xf32>
    %26 = arith.mulf %25, %25 : vector<16x512xf32>
    %cst_11 = arith.constant dense<0.000000e+00> : vector<16xf32>
    %27 = vector.multi_reduction <add>, %26, %cst_11 [1] : vector<16x512xf32> to vector<16xf32>
    %28 = vector.shape_cast %27 : vector<16xf32> to vector<16x1xf32>
    %cst_12 = arith.constant 2.500000e-03 : f32
    %29 = vector.broadcast %cst_12 : f32 to vector<16x1xf32>
    %30 = arith.mulf %28, %29 : vector<16x1xf32>
    %cst_13 = arith.constant 9.99999974E-6 : f32
    %31 = vector.broadcast %cst_13 : f32 to vector<16x1xf32>
    %32 = arith.addf %30, %31 : vector<16x1xf32>
    %33 = math.rsqrt %32 : vector<16x1xf32>
    %34 = vector.broadcast %33 : vector<16x1xf32> to vector<16x512xf32>
    %35 = arith.mulf %23, %34 : vector<16x512xf32>
    %36 = vector.broadcast %2 : vector<1x512xf32> to vector<16x512xf32>
    %37 = arith.mulf %35, %36 : vector<16x512xf32>
    %38 = vector.broadcast %3 : vector<1x512xf32> to vector<16x512xf32>
    %39 = arith.addf %37, %38 : vector<16x512xf32>
    %cst_14 = arith.constant 0.000000e+00 : f32
    %40 = vector.broadcast %cst_14 : f32 to vector<16x512xf32>
    %41 = arith.cmpf oge, %39, %40 : vector<16x512xf32>
    %cst_15 = arith.constant 0.00999999977 : f32
    %42 = vector.broadcast %cst_15 : f32 to vector<16x512xf32>
    %43 = arith.mulf %42, %39 : vector<16x512xf32>
    %44 = arith.select %41, %39, %43 : vector<16x512xi1>, vector<16x512xf32>
    %45 = arith.truncf %44 : vector<16x512xf32> to vector<16x512xbf16>
    %c0_16 = arith.constant 0 : index
    %c0_17 = arith.constant 0 : index
    %46 = vector.load %arg5[%c0_16, %c0_17] : memref<512x384xbf16, #tpu.memory_space<vmem>>, vector<512x384xbf16>
    %cst_18 = arith.constant dense<0.000000e+00> : vector<16x384xf32>
    %47 = tpu.matmul %45, %46, %cst_18 {dimension_numbers = #tpu.dot_dimension_numbers<[1], [0], [0], [1], [0, 0, 1, 1], [], []>} : vector<16x512xbf16>, vector<512x384xbf16>, vector<16x384xf32> -> vector<16x384xf32>
    %48 = vector.broadcast %5 : vector<1x384xf32> to vector<16x384xf32>
    %49 = arith.addf %47, %48 : vector<16x384xf32>
    %50 = vector.extract_strided_slice %49 {offsets = [0, 0], sizes = [16, 1], strides = [1, 1]} : vector<16x384xf32> to vector<16x1xf32>
    %cst_19 = arith.constant 0.00333333341 : f32
    %51 = vector.broadcast %cst_19 : f32 to vector<16x1xf32>
    %52 = arith.mulf %50, %51 : vector<16x1xf32>
    %53 = vector.broadcast %52 : vector<16x1xf32> to vector<16x384xf32>
    %54 = arith.subf %49, %53 : vector<16x384xf32>
    %55 = vector.broadcast %8 : vector<1x384xf32> to vector<16x384xf32>
    %56 = arith.mulf %54, %55 : vector<16x384xf32>
    %57 = arith.mulf %56, %56 : vector<16x384xf32>
    %cst_20 = arith.constant dense<0.000000e+00> : vector<16xf32>
    %58 = vector.multi_reduction <add>, %57, %cst_20 [1] : vector<16x384xf32> to vector<16xf32>
    %59 = vector.shape_cast %58 : vector<16xf32> to vector<16x1xf32>
    %cst_21 = arith.constant 0.00333333341 : f32
    %60 = vector.broadcast %cst_21 : f32 to vector<16x1xf32>
    %61 = arith.mulf %59, %60 : vector<16x1xf32>
    %cst_22 = arith.constant 9.99999974E-6 : f32
    %62 = vector.broadcast %cst_22 : f32 to vector<16x1xf32>
    %63 = arith.addf %61, %62 : vector<16x1xf32>
    %64 = math.rsqrt %63 : vector<16x1xf32>
    %65 = vector.broadcast %64 : vector<16x1xf32> to vector<16x384xf32>
    %66 = arith.mulf %54, %65 : vector<16x384xf32>
    %67 = vector.broadcast %6 : vector<1x384xf32> to vector<16x384xf32>
    %68 = arith.mulf %66, %67 : vector<16x384xf32>
    %69 = vector.broadcast %7 : vector<1x384xf32> to vector<16x384xf32>
    %70 = arith.addf %68, %69 : vector<16x384xf32>
    %cst_23 = arith.constant 0.000000e+00 : f32
    %71 = vector.broadcast %cst_23 : f32 to vector<16x384xf32>
    %72 = arith.cmpf oge, %70, %71 : vector<16x384xf32>
    %cst_24 = arith.constant 0.00999999977 : f32
    %73 = vector.broadcast %cst_24 : f32 to vector<16x384xf32>
    %74 = arith.mulf %73, %70 : vector<16x384xf32>
    %75 = arith.select %72, %70, %74 : vector<16x384xi1>, vector<16x384xf32>
    %76 = arith.truncf %75 : vector<16x384xf32> to vector<16x384xbf16>
    %c0_25 = arith.constant 0 : index
    %c0_26 = arith.constant 0 : index
    %77 = vector.load %arg6[%c0_25, %c0_26] : memref<384x128xbf16, #tpu.memory_space<vmem>>, vector<384x128xbf16>
    %cst_27 = arith.constant dense<0.000000e+00> : vector<16x128xf32>
    %78 = tpu.matmul %76, %77, %cst_27 {dimension_numbers = #tpu.dot_dimension_numbers<[1], [0], [0], [1], [0, 0, 1, 1], [], []>} : vector<16x384xbf16>, vector<384x128xbf16>, vector<16x128xf32> -> vector<16x128xf32>
    %79 = vector.extract_strided_slice %78 {offsets = [0, 0], sizes = [16, 1], strides = [1, 1]} : vector<16x128xf32> to vector<16x1xf32>
    %80 = vector.broadcast %9 : vector<1x1xf32> to vector<16x1xf32>
    %81 = arith.addf %79, %80 : vector<16x1xf32>
    %82 = vector.shape_cast %81 : vector<16x1xf32> to vector<1x1x16xf32>
    %c0_28 = arith.constant 0 : index
    %c0_29 = arith.constant 0 : index
    %c0_30 = arith.constant 0 : index
    %83 = vector.load %arg8[%c0_28, %c0_29, %c0_30] : memref<1x1x16xf32, #tpu.memory_space<vmem>>, vector<1x1x16xf32>
    tpu.vector_store %arg8[%c0_28, %c0_29, %c0_30], %82 {strides = array<i32>} : memref<1x1x16xf32, #tpu.memory_space<vmem>>, vector<1x1x16xf32>,
    return
  }
  func.func @transform_0(%arg0: i32) -> (i32, i32) {
    %c0_i32 = arith.constant 0 : i32
    %c0_i32_0 = arith.constant 0 : i32
    return %arg0, %c0_i32 : i32, i32
  }
  func.func @transform_1(%arg0: i32) -> (i32, i32) {
    %c0_i32 = arith.constant 0 : i32
    %c0_i32_0 = arith.constant 0 : i32
    return %arg0, %c0_i32 : i32, i32
  }
  func.func @transform_2(%arg0: i32) -> (i32, i32) {
    %c0_i32 = arith.constant 0 : i32
    %c0_i32_0 = arith.constant 0 : i32
    %c0_i32_1 = arith.constant 0 : i32
    return %c0_i32, %c0_i32_0 : i32, i32
  }
  func.func @transform_3(%arg0: i32) -> (i32, i32) {
    %c0_i32 = arith.constant 0 : i32
    %c0_i32_0 = arith.constant 0 : i32
    %c0_i32_1 = arith.constant 0 : i32
    return %c0_i32, %c0_i32_0 : i32, i32
  }
  func.func @transform_4(%arg0: i32) -> (i32, i32) {
    %c0_i32 = arith.constant 0 : i32
    %c0_i32_0 = arith.constant 0 : i32
    %c0_i32_1 = arith.constant 0 : i32
    return %c0_i32, %c0_i32_0 : i32, i32
  }
  func.func @transform_5(%arg0: i32) -> (i32, i32) {
    %c0_i32 = arith.constant 0 : i32
    %c0_i32_0 = arith.constant 0 : i32
    %c0_i32_1 = arith.constant 0 : i32
    return %c0_i32, %c0_i32_0 : i32, i32
  }
  func.func @transform_6(%arg0: i32) -> (i32, i32) {
    %c0_i32 = arith.constant 0 : i32
    %c0_i32_0 = arith.constant 0 : i32
    %c0_i32_1 = arith.constant 0 : i32
    return %c0_i32, %c0_i32_0 : i32, i32
  }
  func.func @transform_7(%arg0: i32) -> (i32, i32, i32) {
    %c0_i32 = arith.constant 0 : i32
    %c0_i32_0 = arith.constant 0 : i32
    %c0_i32_1 = arith.constant 0 : i32
    return %arg0, %c0_i32, %c0_i32_0 : i32, i32, i32
  }
}

</mosaic_0001>

<bundles_post_ra>
// kernel: tpu_custom_call.1
= control target key start
LH: loop header
LB: loop body
LE: loop exit
PB: predicated region body
PF: predicated region fallthrough
CT: control target
= control target key end

     0   :  { %12 = vsyncpa [#allocation3], 0  ;;  %s2608_s0 = inlined_call_operand.vmem [shape: bf16[16,16], index: 0, kind: input, shape index: {}]   ;;  %s2609_s1 = inlined_call_operand.vmem [shape: bf16[16,4], index: 1, kind: input, shape index: {}]   ;;  %s2610_s2 = inlined_call_operand.hbm [shape: bf16[16,512], index: 2, kind: input, shape index: {}]   ;;  %s2611_s3 = inlined_call_operand.vmem [shape: bf16[4,512], index: 3, kind: input, shape index: {}]   ;;  %s2612_s4 = inlined_call_operand.hbm [shape: bf16[512,384], index: 4, kind: input, shape index: {}]   ;;  %s2613_s5 = inlined_call_operand.hbm [shape: bf16[384,128], index: 5, kind: input, shape index: {}]   ;;  %s2614_s6 = inlined_call_operand.hbm [shape: f32[16,512], index: 6, kind: input, shape index: {}]   ;;  %s2615_s7 = inlined_call_operand.hbm [shape: f32[1,1,16], index: 7, kind: output, shape index: {}]  }
   0x1   :  { %13 = vsyncpa [#allocation6], 0 }
   0x2   :  { %14 = vsyncpa [#allocation9], 0 }
   0x3   :  { %15 = vsyncpa [#allocation4], 0  ;;  %s2323_s24 = smov [#allocation5]   ;;  %s2205_s28 = scalar_lea.hbm %s2612_s4, 12288 }
   0x4   :  { %s39_s25 = sshll.u32 %s2323_s24, 4  ;;  %p2206_p0 = scmp.ne.s32.totalorder %s2612_s4, %s2205_s28  ;;  %s40_s25 = int_to_ptr.vmem [resolvable:$true] %s39_s25 }
   0x5   :  { %p2209_p1 = scmp.lt.u32.totalorder %s2205_s28, %s2612_s4 }
   0x7   :  { %p2211_p2 = pnand %p2209_p1, %p2206_p0 }
   0x9   :  { %2214 = shalt.err (!%p2211_p2)
}
   0xa   :  { %s2215_s10 = scalar_lea.vmem %s40_s25, 12288  ;;  %p2220_p4 = scmp.lt.s32.totalorder %s40_s25, %s40_s25 }
   0xb   :  { %p2216_p3 = scmp.ne.s32.totalorder %s40_s25, %s2215_s10  ;;  %p2221_p5 = scmp.lt.s32.totalorder %s2215_s10, %s2215_s10 }
   0xd   :  { %p2222_p6 = por %p2221_p5, %p2220_p4 }
   0xf   :  { %p2223_p7 = pnand %p2222_p6, %p2216_p3 }
  0x11   :  { %2226 = shalt.err (!%p2223_p7)
}
  0x12   :  { %s2324_s11 = smov 192   ;;  %s2325_s12 = smov 12  }
  0x13   :  { %45 = dma.hbm_to_vmem [thread:$0]  %s2612_s4, 12288, %s40_s25, [#allocation6], %s2324_s11, %s2324_s11, %s2325_s12  }
  0x14   :  { %s2326_s15 = smov [#allocation2]   ;;  %s2227_s19 = scalar_lea.hbm %s2610_s2, 512 }
  0x15   :  { %s25_s16 = sshll.u32 %s2326_s15, 4  ;;  %p2228_p8 = scmp.ne.s32.totalorder %s2610_s2, %s2227_s19  ;;  %s26_s16 = int_to_ptr.vmem [resolvable:$true] %s25_s16 }
  0x16   :  { %p2231_p9 = scmp.lt.u32.totalorder %s2227_s19, %s2610_s2 }
  0x18   :  { %p2233_p10 = pnand %p2231_p9, %p2228_p8 }
  0x1a   :  { %2236 = shalt.err (!%p2233_p10)
}
  0x1b   :  { %s2237_s24 = scalar_lea.vmem %s26_s16, 512  ;;  %p2242_p12 = scmp.lt.s32.totalorder %s26_s16, %s26_s16 }
  0x1c   :  { %p2238_p11 = scmp.ne.s32.totalorder %s26_s16, %s2237_s24  ;;  %p2243_p13 = scmp.lt.s32.totalorder %s2237_s24, %s2237_s24 }
  0x1e   :  { %p2244_p0 = por %p2243_p13, %p2242_p12 }
  0x20   :  { %p2245_p1 = pnand %p2244_p0, %p2238_p11 }
  0x22   :  { %2248 = shalt.err (!%p2245_p1)
}
  0x23   :  { %s2327_s4 = smov 256   ;;  %s2328_s25 = smov 16  }
  0x24   :  { %31 = dma.hbm_to_vmem [thread:$0]  %s2610_s2, 512, %s26_s16, [#allocation3], %s2327_s4, %s2327_s4, %s2328_s25  }
  0x25   :  { %s2329_s28 = smov [#allocation7]   ;;  %s2249_s9 = scalar_lea.hbm %s2613_s5, 3072 }
  0x26   :  { %s51_s29 = sshll.u32 %s2329_s28, 4  ;;  %p2250_p2 = scmp.ne.s32.totalorder %s2613_s5, %s2249_s9  ;;  %s52_s29 = int_to_ptr.vmem [resolvable:$true] %s51_s29 }
  0x27   :  { %p2253_p3 = scmp.lt.u32.totalorder %s2249_s9, %s2613_s5 }
  0x29   :  { %p2255_p4 = pnand %p2253_p3, %p2250_p2 }
  0x2b   :  { %2258 = shalt.err (!%p2255_p4)
}
  0x2c   :  { %s2259_s14 = scalar_lea.vmem %s52_s29, 3072  ;;  %p2264_p6 = scmp.lt.s32.totalorder %s52_s29, %s52_s29 }
  0x2d   :  { %p2260_p5 = scmp.ne.s32.totalorder %s52_s29, %s2259_s14  ;;  %p2265_p7 = scmp.lt.s32.totalorder %s2259_s14, %s2259_s14 }
  0x2f   :  { %p2266_p8 = por %p2265_p7, %p2264_p6 }
  0x31   :  { %p2267_p9 = pnand %p2266_p8, %p2260_p5 }
  0x33   :  { %2270 = shalt.err (!%p2267_p9)
}
  0x34   :  { %s2330_s2 = smov 64   ;;  %s2331_s15 = smov 4  }
  0x35   :  { %57 = dma.hbm_to_vmem [thread:$0]  %s2613_s5, 3072, %s52_s29, [#allocation6], %s2330_s2, %s2330_s2, %s2331_s15  }
  0x36   :  { %s2332_s18 = smov [#allocation8]   ;;  %s2271_s22 = scalar_lea.hbm %s2614_s6, 1024 }
  0x37   :  { %s63_s19 = sshll.u32 %s2332_s18, 4  ;;  %p2272_p10 = scmp.ne.s32.totalorder %s2614_s6, %s2271_s22  ;;  %s64_s19 = int_to_ptr.vmem [resolvable:$true] %s63_s19 }
  0x38   :  { %p2275_p11 = scmp.lt.u32.totalorder %s2271_s22, %s2614_s6 }
  0x3a   :  { %p2277_p12 = pnand %p2275_p11, %p2272_p10 }
  0x3c   :  { %2280 = shalt.err (!%p2277_p12)
}
  0x3d   :  { %s2281_s26 = scalar_lea.vmem %s64_s19, 1024  ;;  %p2286_p0 = scmp.lt.s32.totalorder %s64_s19, %s64_s19 }
  0x3e   :  { %p2282_p13 = scmp.ne.s32.totalorder %s64_s19, %s2281_s26  ;;  %p2287_p1 = scmp.lt.s32.totalorder %s2281_s26, %s2281_s26 }
  0x40   :  { %p2288_p2 = por %p2287_p1, %p2286_p0 }
  0x42   :  { %p2289_p3 = pnand %p2288_p2, %p2282_p13 }
  0x44   :  { %2292 = shalt.err (!%p2289_p3)
}
  0x45   :  { %s2333_s5 = smov 512   ;;  %s2334_s27 = smov 32  }
  0x46   :  { %69 = dma.hbm_to_vmem [thread:$0]  %s2614_s6, 1024, %s64_s19, [#allocation9], %s2333_s5, %s2333_s5, %s2334_s27  }
  0x47   :  { %2315 = dma.done.wait [#allocation3], 512  }
  0x48   :  { %2316 = vsyncadd [#allocation3], 4294966784 }
  0x49   :  { %2317 = dma.done.wait [#allocation6], 15360  }
  0x4a   :  { %2318 = vsyncadd [#allocation6], 4294951936 }
  0x4b   :  { %2319 = dma.done.wait [#allocation9], 1024  }
  0x4c   :  { %2320 = vsyncadd [#allocation9], 4294966272  ;;  %v107_v0 = vlaneseq  ;;  %v2335_v1 = vmov 1983009808   ;;  %v2336_v3 = vmov 0   ;;  %v96_v7 = vld [vmem:[%s2611_s3] sm:$0xff] }
  0x4d   :  { %v105_v2 = vunpack.c.l.s4 %v2335_v1  ;;  %169 = vmatprep.mubr.bf16.mxu0 %v2336_v3  ;;  %212 = vmatprep.mubr.bf16.mxu1 %v2336_v3  ;;  %vm124_vm0 = vcmask 1041408   ;;  %v103_v9 = vcombine.high %v96_v7, %v96_v7  ;;  %v2039_v12 = vld [vmem:[#allocation2 + $0x4] ss:$16 sps:$4 sm:$0xff]   ;;  %v2037_v15 = vld [vmem:[#allocation2] ss:$16 sps:$4 sm:$0xff]   ;;  %vm120_vm1 = vcmask 31744  }
  0x4e   :  { %v2429_v4 = vshrl.u32 %v107_v0, 7  ;;  %2034 = vset.pattern.permute.xlu0 %v2336_v3  ;;  %2035 = vset.pattern.permute.xlu1 %v2336_v3  ;;  %v2036_v14 = vld [vmem:[%s2609_s1] sm:$0xff]   ;;  %v2044_v18 = vld [vmem:[#allocation2 + $0xc] ss:$16 sps:$4 sm:$0xff]   ;;  %v2042_v19 = vld [vmem:[#allocation2 + $0x8] ss:$16 sps:$4 sm:$0xff]  }
  0x4f   :  { %v106_v5 = vunpack.c.0.s8 %v105_v2  ;;  %v2040_v20 = vld [vmem:[%s2608_s0] sm:$0xff]   ;;  %vm248_vm2 = vcmask 130048   ;;  %v2448_v23 = vld [vmem:[#allocation8 + $0x8] sm:$0xff]  ;;  %v2450_v24 = vld [vmem:[#allocation8 + $0x10] sm:$0xff]  ;;  %vm2338_vm15 = vmmov 0   ;;  %s2339_s0 = smov [#allocation10]  }
  0x50   :  { %v340_v21 = vsub.s32 0, %v2429_v4  ;;  %v2446_v22 = vld [vmem:[#allocation8] sm:$0xff]  ;;  %v2453_v26 = vld [vmem:[#allocation8 + $0x18] sm:$0xff]  ;;  %v2072_v53 = vld [vmem:[#allocation5 + $0xc8] ss:$12 sps:$4 sm:$0xff]   ;;  %s1763_s10 = sshll.u32 %s2339_s0, 4  ;;  %s1764_s10 = int_to_ptr.vmem [resolvable:$true] %s1763_s10 }
  0x51   :  { %v109_v6 = vsub.s32 %v106_v5, %v2429_v4  ;;  %v2045_v48 = vld [vmem:[#allocation5] ss:$12 sps:$4 sm:$0xff]   ;;  %v2047_v49 = vld [vmem:[#allocation5 + $0x4] ss:$12 sps:$4 sm:$0xff]   ;;  %v2050_v50 = vld [vmem:[#allocation5 + $0x1c] ss:$12 sps:$4 sm:$0xff]   ;;  %p2298_p5 = scmp.lt.s32.totalorder %s1764_s10, %s1764_s10 }
  0x52   :  { %v341_v25 = vrot.slane %v2446_v22, %v340_v21  ;;  %v345_v27 = vrot.slane %v2448_v23, %v340_v21  ;;  %v349_v28 = vrot.slane %v2450_v24, %v340_v21  ;;  %v353_v30 = vrot.slane %v2453_v26, %v340_v21  ;;  %v2048_v51 = vld [vmem:[#allocation5 + $0x18] ss:$12 sps:$4 sm:$0xff]   ;;  %v2053_v52 = vld [vmem:[#allocation5 + $0x34] ss:$12 sps:$4 sm:$0xff]   ;;  %v2051_v55 = vld [vmem:[#allocation5 + $0x30] ss:$12 sps:$4 sm:$0xff]  }
  0x53   :  { %v110_v8 = vrot.slane %v96_v7, %v109_v6  ;;  %v117_v13 = vrot.slane %v103_v9, %v109_v6  ;;  %v2073_v54 = vld [vmem:[#allocation5 + $0x8] ss:$12 sps:$4 sm:$0xff]   ;;  %v2056_v56 = vld [vmem:[#allocation5 + $0x4c] ss:$12 sps:$4 sm:$0xff]   ;;  %v2059_v58 = vld [vmem:[#allocation5 + $0x64] ss:$12 sps:$4 sm:$0xff]  }
  0x54   :  { %v2054_v57 = vld [vmem:[#allocation5 + $0x48] ss:$12 sps:$4 sm:$0xff]   ;;  %v2057_v59 = vld [vmem:[#allocation5 + $0x60] ss:$12 sps:$4 sm:$0xff]   ;;  %v2060_v61 = vld [vmem:[#allocation5 + $0x78] ss:$12 sps:$4 sm:$0xff]  }
  0x55   :  { %v118_v10 = vcombine.high %v110_v8, %v110_v8  ;;  %v126_v11 = vsel %vm124_vm0, %v110_v8, 0  ;;  %v119_v16 = vcombine.high %v117_v13, %v117_v13  ;;  %v132_v17 = vsel %vm124_vm0, %v117_v13, 0  ;;  %v2062_v60 = vld [vmem:[#allocation5 + $0x7c] ss:$12 sps:$4 sm:$0xff]   ;;  %v2065_v62 = vld [vmem:[#allocation5 + $0x94] ss:$12 sps:$4 sm:$0xff]  }
  0x56   :  { %v2063_v63 = vld [vmem:[#allocation5 + $0x90] ss:$12 sps:$4 sm:$0xff]   ;;  %v2068_v1 = vld [vmem:[#allocation5 + $0xac] ss:$12 sps:$4 sm:$0xff]   ;;  %v2066_v2 = vld [vmem:[#allocation5 + $0xa8] ss:$12 sps:$4 sm:$0xff]  }
  0x57   :  { %1775 = vmatprep.subr.msk.bf16.mxu0 %vm124_vm0, %v118_v10  ;;  %1777 = vmatprep.subr.msk.bf16.mxu1 %vm124_vm0, %v119_v16  ;;  %v2069_v5 = vld [vmem:[#allocation5 + $0xc0] ss:$12 sps:$4 sm:$0xff]   ;;  %v384_v6 = vsub.s32 3, %v2429_v4  ;;  %s2293_s11 = scalar_lea.vmem %s1764_s10, 16  ;;  %s2297_s12 = scalar_lea.vmem %s1764_s10, 32 }
  0x58   :  { %138 = vmatpush1.bf16.msra.mxu0 %v126_v11  ;;  %181 = vmatpush1.bf16.msra.mxu1 %v132_v17  ;;  %p2294_p4 = scmp.ne.s32.totalorder %s1764_s10, %s2293_s11  ;;  %p2299_p6 = scmp.lt.s32.totalorder %s2297_s12, %s2293_s11 }
  0x59   :  { %252 = vmatprep.subr.bf16.mxu0 %v2039_v12  ;;  %295 = vmatprep.subr.bf16.mxu1 %v2044_v18  ;;  %v385_v7 = vrot.slane %v2446_v22, %v384_v6  ;;  %v389_v8 = vrot.slane %v2448_v23, %v384_v6  ;;  %v393_v10 = vrot.slane %v2450_v24, %v384_v6 }
  0x5a   :  { %p2300_p7 = por %p2299_p6, %p2298_p5 }
  0x5b   :  { %1776 = vmatmul.mubr.msk.bf16.vlgmr.msra.gmra.mrb[0].mxu0 %vm120_vm1, %v2036_v14  ;;  %1778 = vmatmul.mubr.msk.bf16.vlgmr.msra.gmra.mrb[0].mxu1 %vm120_vm1, %v2036_v14 }
  0x5c   :  { %253 = vmatpush1.bf16.msra.mxu0 %v2037_v15  ;;  %284 = vmatprep.mubr.bf16.mxu0 %v2336_v3  ;;  %v397_v15 = vrot.slane %v2453_v26, %v384_v6  ;;  %v2102_v6 = vld [vmem:[#allocation5 + $0x158] ss:$12 sps:$4 sm:$0xff]   ;;  %p2301_p8 = pnand %p2300_p7, %p2294_p4 }
  0x5d   :  { %296 = vmatpush1.bf16.msra.mxu1 %v2042_v19  ;;  %327 = vmatprep.mubr.bf16.mxu1 %v2336_v3  ;;  %v2071_v3 = vld [vmem:[#allocation5 + $0xc4] ss:$12 sps:$4 sm:$0xff]  }
  0x5e   :  { %1166 = vmatprep.subr.bf16.mxu0 %v2047_v49  ;;  %1906 = vmatprep.subr.bf16.mxu1 %v2072_v53  ;;  %v2074_v49 = vld [vmem:[#allocation5 + $0xd8] ss:$12 sps:$4 sm:$0xff]   ;;  %v2079_v53 = vld [vmem:[#allocation5 + $0xf0] ss:$12 sps:$4 sm:$0xff]  }
  0x67   :  { %1784 = vmatmul.mubr.msk.bf16.vlgmr.msra.gmra.mrb[0].mxu0 %vm248_vm2, %v2040_v20  ;;  %1785 = vmatmul.mubr.msk.bf16.vlgmr.msra.gmra.mrb[0].mxu1 %vm248_vm2, %v2040_v20  ;;  %vm1752_vm2 = vcmask 130112  }
  0x68   :  { %1167 = vmatpush1.bf16.msra.mxu0 %v2045_v48  ;;  %1907 = vmatpush3.bf16.msra.mxu1 %v2073_v54  ;;  %v2077_v48 = vld [vmem:[#allocation5 + $0xe0] ss:$12 sps:$4 sm:$0xff]   ;;  %v2083_v54 = vld [vmem:[#allocation5 + $0x38] ss:$12 sps:$4 sm:$0xff]  }
  0x69   :  { %1168 = vmatprep.subr.bf16.mxu0 %v2050_v50  ;;  %v2078_v50 = vld [vmem:[#allocation5 + $0x20] ss:$12 sps:$4 sm:$0xff]   ;;  %1908 = vmatprep.subr.bf16.mxu1 %v2077_v48 }
  0x6c   :  { %1169 = vmatpush1.bf16.msra.mxu0 %v2048_v51  ;;  %1909 = vmatpush3.bf16.msra.mxu1 %v2078_v50  ;;  %v2081_v51 = vld [vmem:[#allocation5 + $0xf4] ss:$12 sps:$4 sm:$0xff]  }
  0x6d   :  { %1170 = vmatprep.subr.bf16.mxu0 %v2053_v52  ;;  %v2082_v52 = vld [vmem:[#allocation5 + $0xf8] ss:$12 sps:$4 sm:$0xff]  }
  0x6e   :  { %1910 = vmatprep.subr.bf16.mxu1 %v2082_v52 }
  0x70   :  { %1171 = vmatpush1.bf16.msra.mxu0 %v2051_v55  ;;  %1911 = vmatpush3.bf16.msra.mxu1 %v2083_v54  ;;  %v2084_v55 = vld [vmem:[#allocation5 + $0x108] ss:$12 sps:$4 sm:$0xff]  }
  0x71   :  { %1172 = vmatprep.subr.bf16.mxu0 %v2056_v56  ;;  %v2086_v56 = vld [vmem:[#allocation5 + $0x10c] ss:$12 sps:$4 sm:$0xff]  }
  0x74   :  { %1173 = vmatpush1.bf16.msra.mxu0 %v2054_v57  ;;  %v2087_v57 = vld [vmem:[#allocation5 + $0x110] ss:$12 sps:$4 sm:$0xff]  }
  0x75   :  { %1174 = vmatprep.subr.bf16.mxu0 %v2059_v58  ;;  %v2088_v58 = vld [vmem:[#allocation5 + $0x50] ss:$12 sps:$4 sm:$0xff]   ;;  %1912 = vmatprep.subr.bf16.mxu1 %v2087_v57 }
  0x76   :  { %1913 = vmatpush3.bf16.msra.mxu1 %v2088_v58 }
  0x78   :  { %1175 = vmatpush1.bf16.msra.mxu0 %v2057_v59  ;;  %v2091_v59 = vld [vmem:[#allocation5 + $0x124] ss:$12 sps:$4 sm:$0xff]  }
  0x79   :  { %1176 = vmatprep.subr.bf16.mxu0 %v2062_v60  ;;  %v2092_v60 = vld [vmem:[#allocation5 + $0x128] ss:$12 sps:$4 sm:$0xff]  }
  0x7a   :  { %1914 = vmatprep.subr.bf16.mxu1 %v2092_v60 }
  0x7c   :  { %1177 = vmatpush1.bf16.msra.mxu0 %v2060_v61  ;;  %v2089_v61 = vld [vmem:[#allocation5 + $0x120] ss:$12 sps:$4 sm:$0xff]  }
  0x7d   :  { %1178 = vmatprep.subr.bf16.mxu0 %v2065_v62  ;;  %v2093_v62 = vld [vmem:[#allocation5 + $0x68] ss:$12 sps:$4 sm:$0xff]  }
  0x7e   :  { %1915 = vmatpush3.bf16.msra.mxu1 %v2093_v62 }
  0x80   :  { %1179 = vmatpush1.bf16.msra.mxu0 %v2063_v63  ;;  %v2096_v63 = vld [vmem:[#allocation5 + $0x13c] ss:$12 sps:$4 sm:$0xff]  }
  0x81   :  { %1180 = vmatprep.subr.bf16.mxu0 %v2068_v1  ;;  %v2097_v1 = vld [vmem:[#allocation5 + $0x140] ss:$12 sps:$4 sm:$0xff]  }
  0x82   :  { %1916 = vmatprep.subr.bf16.mxu1 %v2097_v1 }
  0x84   :  { %1181 = vmatpush1.bf16.msra.mxu0 %v2066_v2  ;;  %v2094_v2 = vld [vmem:[#allocation5 + $0x138] ss:$12 sps:$4 sm:$0xff]  }
  0x85   :  { %1182 = vmatprep.subr.bf16.mxu0 %v2071_v3  ;;  %v2098_v3 = vld [vmem:[#allocation5 + $0x80] ss:$12 sps:$4 sm:$0xff]  }
  0x86   :  { %1917 = vmatpush3.bf16.msra.mxu1 %v2098_v3 }
  0x87   :  { %1918 = vmatprep.subr.bf16.mxu1 %v2102_v6 }
  0x88   :  { %1183 = vmatpush1.bf16.msra.mxu0 %v2069_v5  ;;  %v2101_v5 = vld [vmem:[#allocation5 + $0x154] ss:$12 sps:$4 sm:$0xff]  }
 0x13a   :  { %v286_v29 = vpop.f32.mrb[0].mxu0  ;;  %v329_v35 = vpop.f32.mrb[0].mxu1 }
 0x13b   :  { %v2458_v31 = vadd.f32 %v341_v25, %v286_v29  ;;  %v288_v32 = vpop.f32.mrb[1].mxu0  ;;  %v356_v39 = vadd.f32 %v349_v28, %v329_v35  ;;  %v331_v40 = vpop.f32.mrb[1].mxu1 }
 0x13c   :  { %v2460_v33 = vadd.f32 %v345_v27, %v288_v32  ;;  %v290_v34 = vpop.f32.mrb[2].mxu0  ;;  %v357_v42 = vadd.f32 %v353_v30, %v331_v40  ;;  %v333_v43 = vpop.f32.mrb[2].mxu1 }
 0x13d   :  { %v2462_v36 = vadd.f32 %v341_v25, %v290_v34  ;;  %v292_v37 = vpop.f32.mrb[3].mxu0  ;;  %v362_v38 = vmul.f32 0.0025, %v2458_v31  ;;  %v360_v44 = vadd.f32 %v349_v28, %v333_v43  ;;  %v335_v45 = vpop.f32.mrb[3].mxu1 }
 0x13e   :  { %v2465_v41 = vadd.f32 %v345_v27, %v292_v37  ;;  %v361_v46 = vadd.f32 %v353_v30, %v335_v45 }
 0x13f   :  { %366 = vperm.xlu0 %2034, %v362_v38   ;;  %v363_v47 = vmul.f32 0.0025, %v2462_v36 }
 0x143   :  { %371 = vperm.xlu0 %2034, %v363_v47   ;;  %v2076_v47 = vld [vmem:[#allocation5 + $0xdc] ss:$12 sps:$4 sm:$0xff]  }
 0x144   :  { %1184 = vmatprep.subr.bf16.mxu0 %v2076_v47 }
 0x145   :  { %1185 = vmatpush1.bf16.msra.mxu0 %v2074_v49 }
 0x146   :  { %1186 = vmatprep.subr.bf16.mxu0 %v2081_v51 }
 0x149   :  { %1187 = vmatpush1.bf16.msra.mxu0 %v2079_v53 }
 0x14a   :  { %1188 = vmatprep.subr.bf16.mxu0 %v2086_v56 }
 0x14d   :  { %1189 = vmatpush1.bf16.msra.mxu0 %v2084_v55 }
 0x14e   :  { %1190 = vmatprep.subr.bf16.mxu0 %v2091_v59 }
 0x151   :  { %1191 = vmatpush1.bf16.msra.mxu0 %v2089_v61 }
 0x152   :  { %1192 = vmatprep.subr.bf16.mxu0 %v2096_v63 }
 0x155   :  { %1193 = vmatpush1.bf16.msra.mxu0 %v2094_v2  ;;  %v2109_v2 = vld [vmem:[#allocation5 + $0x180] ss:$12 sps:$4 sm:$0xff]  }
 0x156   :  { %1194 = vmatprep.subr.bf16.mxu0 %v2101_v5  ;;  %v2113_v5 = vld [vmem:[#allocation5 + $0x188] ss:$12 sps:$4 sm:$0xff]  }
 0x1be   :  { %v367_v9 = vpop.permute.xlu0 %366 }
 0x1bf   :  { %v2473_v11 = vsub.f32 %v2458_v31, %v367_v9  ;;  %v2476_v12 = vsub.f32 %v2460_v33, %v367_v9  ;;  %v2478_v13 = vsub.f32 %v356_v39, %v367_v9  ;;  %v2480_v14 = vsub.f32 %v357_v42, %v367_v9  ;;  %v2106_v9 = vld [vmem:[#allocation5 + $0x16c] ss:$12 sps:$4 sm:$0xff]  }
 0x1c1   :  { %v398_v16 = vmul.f32 %v385_v7, %v2473_v11  ;;  %v399_v17 = vmul.f32 %v389_v8, %v2476_v12  ;;  %v400_v19 = vmul.f32 %v393_v10, %v2478_v13  ;;  %v401_v28 = vmul.f32 %v397_v15, %v2480_v14 }
 0x1c2   :  { %v372_v18 = vpop.permute.xlu0 %371 }
 0x1c3   :  { %v2487_v20 = vsub.f32 %v2462_v36, %v372_v18  ;;  %v2490_v21 = vsub.f32 %v2465_v41, %v372_v18  ;;  %v2492_v25 = vsub.f32 %v360_v44, %v372_v18  ;;  %v2494_v27 = vsub.f32 %v361_v46, %v372_v18  ;;  %v2112_v18 = vld [vmem:[#allocation5 + $0x248] ss:$12 sps:$4 sm:$0xff]  }
 0x1c4   :  { %v406_v29 = vmul.f32 %v398_v16, %v398_v16  ;;  %v407_v30 = vmul.f32 %v399_v17, %v399_v17  ;;  %v408_v34 = vmul.f32 %v400_v19, %v400_v19  ;;  %v409_v39 = vmul.f32 %v401_v28, %v401_v28  ;;  %v2108_v16 = vld [vmem:[#allocation5 + $0xb0] ss:$12 sps:$4 sm:$0xff]  }
 0x1c5   :  { %v402_v31 = vmul.f32 %v385_v7, %v2487_v20  ;;  %v403_v32 = vmul.f32 %v389_v8, %v2490_v21  ;;  %v404_v33 = vmul.f32 %v393_v10, %v2492_v25  ;;  %v405_v36 = vmul.f32 %v397_v15, %v2494_v27  ;;  %v2099_v7 = vld [vmem:[#allocation5 + $0x150] ss:$12 sps:$4 sm:$0xff]   ;;  %v2103_v8 = vld [vmem:[#allocation5 + $0x98] ss:$12 sps:$4 sm:$0xff]   ;;  %v2104_v15 = vld [vmem:[#allocation5 + $0x168] ss:$12 sps:$4 sm:$0xff]  }
 0x1c6   :  { %v414_v35 = vadd.f32 %v407_v30, %v406_v29  ;;  %v2107_v10 = vld [vmem:[#allocation5 + $0x170] ss:$12 sps:$4 sm:$0xff]   ;;  %1195 = vmatpush1.bf16.msra.mxu0 %v2099_v7  ;;  %1919 = vmatpush3.bf16.msra.mxu1 %v2103_v8 }
 0x1c7   :  { %v410_v37 = vmul.f32 %v402_v31, %v402_v31  ;;  %v411_v38 = vmul.f32 %v403_v32, %v403_v32  ;;  %v412_v41 = vmul.f32 %v404_v33, %v404_v33  ;;  %v413_v44 = vmul.f32 %v405_v36, %v405_v36  ;;  %1196 = vmatprep.subr.bf16.mxu0 %v2106_v9  ;;  %v2111_v17 = vld [vmem:[#allocation5 + $0x184] ss:$12 sps:$4 sm:$0xff]   ;;  %v2116_v8 = vld [vmem:[#allocation5 + $0x19c] ss:$12 sps:$4 sm:$0xff]   ;;  %v2117_v9 = vld [vmem:[#allocation5 + $0x260] ss:$12 sps:$4 sm:$0xff]  }
 0x1c8   :  { %v415_v40 = vadd.f32 %v414_v35, %v408_v34  ;;  %1920 = vmatprep.subr.bf16.mxu1 %v2107_v10  ;;  %v2502_v33 = vsub.s32 1, %v2429_v4  ;;  %v2505_v34 = vsub.s32 2, %v2429_v4 }
 0x1c9   :  { %v419_v42 = vadd.f32 %v411_v38, %v410_v37 }
 0x1ca   :  { %v416_v43 = vadd.f32 %v415_v40, %v409_v39  ;;  %1197 = vmatpush1.bf16.msra.mxu0 %v2104_v15  ;;  %1921 = vmatpush3.bf16.msra.mxu1 %v2108_v16  ;;  %v445_v35 = vrot.slane %v2448_v23, %v2502_v33  ;;  %v441_v36 = vrot.slane %v2446_v22, %v2502_v33  ;;  %v2114_v15 = vld [vmem:[#allocation5 + $0x198] ss:$12 sps:$4 sm:$0xff]   ;;  %v2118_v16 = vld [vmem:[#allocation5 + $0x1a0] ss:$12 sps:$4 sm:$0xff]  }
 0x1cb   :  { %v420_v45 = vadd.f32 %v419_v42, %v412_v41  ;;  %1209 = vmatprep.subr.bf16.mxu0 %v2111_v17  ;;  %1928 = vmatprep.subr.bf16.mxu1 %v2112_v18  ;;  %v453_v38 = vrot.slane %v2453_v26, %v2502_v33  ;;  %v469_v39 = vrot.slane %v2448_v23, %v2505_v34  ;;  %v2121_v17 = vld [vmem:[#allocation5 + $0x1b4] ss:$12 sps:$4 sm:$0xff]   ;;  %v2122_v18 = vld [vmem:[#allocation5 + $0x278] ss:$12 sps:$4 sm:$0xff]  }
 0x1cc   :  { %417 = vadd.xlane.f32.xlu1 %v416_v43  ;;  %v465_v42 = vrot.slane %v2446_v22, %v2505_v34  ;;  %v477_v47 = vrot.slane %v2453_v26, %v2505_v34 }
 0x1cd   :  { %v421_v46 = vadd.f32 %v420_v45, %v413_v44 }
 0x1d0   :  { %422 = vadd.xlane.f32.xlu1 %v421_v46 }
 0x259   :  { %v418_v19 = vpop.xlane.xlu1 %417 }
 0x25a   :  { %v424_v28 = vmul.f32 0.0025, %v418_v19  ;;  %v2119_v19 = vld [vmem:[#allocation5 + $0x1b0] ss:$12 sps:$4 sm:$0xff]  }
 0x25c   :  { %v426_v29 = vadd.f32 1e-05, %v424_v28  ;;  %v2123_v28 = vld [vmem:[#allocation5 + $0x1b8] ss:$12 sps:$4 sm:$0xff]  }
 0x25d   :  { %v423_v30 = vpop.xlane.xlu1 %422 }
 0x25e   :  { %2197 = vrsqrt.f32 %v426_v29  ;;  %v425_v31 = vmul.f32 0.0025, %v423_v30  ;;  %v2126_v29 = vld [vmem:[#allocation5 + $0x1cc] ss:$12 sps:$4 sm:$0xff]   ;;  %v2127_v30 = vld [vmem:[#allocation5 + $0x290] ss:$12 sps:$4 sm:$0xff]  }
 0x260   :  { %v427_v32 = vadd.f32 1e-05, %v425_v31  ;;  %v2124_v31 = vld [vmem:[#allocation5 + $0x1c8] ss:$12 sps:$4 sm:$0xff]  }
 0x262   :  { %2199 = vrsqrt.f32 %v427_v32  ;;  %v2128_v32 = vld [vmem:[#allocation5 + $0x1d0] ss:$12 sps:$4 sm:$0xff]  }
 0x268   :  { %v2511_v37 = vpop.eup %2197 }
 0x269   :  { %v431_v40 = vmul.f32 %v2511_v37, %v2476_v12  ;;  %v430_v41 = vmul.f32 %v2511_v37, %v2473_v11  ;;  %v433_v43 = vmul.f32 %v2511_v37, %v2480_v14 }
 0x26b   :  { %v455_v44 = vmul.f32 %v445_v35, %v431_v40  ;;  %v454_v45 = vmul.f32 %v441_v36, %v430_v41  ;;  %v457_v48 = vmul.f32 %v453_v38, %v433_v43  ;;  %v2133_v40 = vld [vmem:[#allocation5 + $0x1e8] ss:$12 sps:$4 sm:$0xff]   ;;  %v432_v41 = vmul.f32 %v2511_v37, %v2478_v13  ;;  %v2142_v13 = vld [vmem:[#allocation5 + $0x2d8] ss:$12 sps:$4 sm:$0xff]  }
 0x26c   :  { %v2525_v46 = vpop.eup %2199  ;;  %v2136_v43 = vld [vmem:[#allocation5 + $0x1fc] ss:$12 sps:$4 sm:$0xff]  }
 0x26d   :  { %v435_v12 = vmul.f32 %v2525_v46, %v2490_v21  ;;  %v479_v49 = vadd.f32 %v469_v39, %v455_v44  ;;  %v434_v11 = vmul.f32 %v2525_v46, %v2487_v20  ;;  %v478_v50 = vadd.f32 %v465_v42, %v454_v45  ;;  %v2137_v44 = vld [vmem:[#allocation5 + $0x2c0] ss:$12 sps:$4 sm:$0xff]  }
 0x26e   :  { %v437_v51 = vmul.f32 %v2525_v46, %v2494_v27  ;;  %v481_v54 = vadd.f32 %v477_v47, %v457_v48  ;;  %v2138_v48 = vld [vmem:[#allocation5 + $0x200] ss:$12 sps:$4 sm:$0xff]  }
 0x26f   :  { %v459_v14 = vmul.f32 %v445_v35, %v435_v12  ;;  %v458_v52 = vmul.f32 %v441_v36, %v434_v11  ;;  %v495_v56 = vmul.f32 0.01, %v479_v49  ;;  %v494_v26 = vmul.f32 0.01, %v478_v50  ;;  %v2131_v35 = vld [vmem:[#allocation5 + $0x1e4] ss:$12 sps:$4 sm:$0xff]  }
 0x270   :  { %v461_v53 = vmul.f32 %v453_v38, %v437_v51  ;;  %vm487_vm3 = vcmp.ge.f32.partialorder %v479_v49, 0.0  ;;  %vm486_vm4 = vcmp.ge.f32.partialorder %v478_v50, 0.0  ;;  %vm489_vm7 = vcmp.ge.f32.partialorder %v481_v54, 0.0  ;;  %v2132_v36 = vld [vmem:[#allocation5 + $0x2a8] ss:$12 sps:$4 sm:$0xff]  }
 0x271   :  { %v483_v55 = vadd.f32 %v469_v39, %v459_v14  ;;  %v482_v57 = vadd.f32 %v465_v42, %v458_v52  ;;  %v497_v20 = vmul.f32 0.01, %v481_v54  ;;  %v503_v27 = vsel %vm487_vm3, %v479_v49, %v495_v56  ;;  %v2129_v39 = vld [vmem:[#allocation5 + $0x1e0] ss:$12 sps:$4 sm:$0xff]   ;;  %v2139_v49 = vld [vmem:[#allocation5 + $0x210] ss:$12 sps:$4 sm:$0xff]  }
 0x272   :  { %v485_v58 = vadd.f32 %v477_v47, %v461_v53  ;;  %v502_v62 = vsel %vm486_vm4, %v478_v50, %v494_v26  ;;  %v436_v38 = vmul.f32 %v2525_v46, %v2492_v25  ;;  %v449_v42 = vrot.slane %v2450_v24, %v2502_v33  ;;  %v2134_v47 = vld [vmem:[#allocation5 + $0x1f8] ss:$12 sps:$4 sm:$0xff]   ;;  %v2141_v12 = vld [vmem:[#allocation5 + $0x214] ss:$12 sps:$4 sm:$0xff]   ;;  %v2147_v14 = vld [vmem:[#allocation5 + $0x2f0] ss:$12 sps:$4 sm:$0xff]  }
 0x273   :  { %vm491_vm5 = vcmp.ge.f32.partialorder %v483_v55, 0.0  ;;  %v499_v21 = vmul.f32 0.01, %v483_v55  ;;  %vm490_vm6 = vcmp.ge.f32.partialorder %v482_v57, 0.0  ;;  %v498_v59 = vmul.f32 0.01, %v482_v57 }
 0x274   :  { %vm493_vm8 = vcmp.ge.f32.partialorder %v485_v58, 0.0  ;;  %v501_v60 = vmul.f32 0.01, %v485_v58  ;;  %v505_v7 = vsel %vm489_vm7, %v481_v54, %v497_v20  ;;  %v460_v45 = vmul.f32 %v449_v42, %v436_v38  ;;  %v2143_v11 = vld [vmem:[#allocation5 + $0x218] ss:$12 sps:$4 sm:$0xff]  }
 0x275   :  { %v507_v61 = vsel %vm491_vm5, %v483_v55, %v499_v21  ;;  %v506_v63 = vsel %vm490_vm6, %v482_v57, %v498_v59  ;;  %v456_v25 = vmul.f32 %v449_v42, %v432_v41  ;;  %v473_v46 = vrot.slane %v2450_v24, %v2505_v34  ;;  %v2146_v51 = vld [vmem:[#allocation5 + $0x22c] ss:$12 sps:$4 sm:$0xff]   ;;  %v2144_v53 = vld [vmem:[#allocation5 + $0x228] ss:$12 sps:$4 sm:$0xff]   ;;  %v2148_v34 = vld [vmem:[#allocation5 + $0x230] ss:$12 sps:$4 sm:$0xff]  }
 0x276   :  { %v511_v1 = vpack.c.bf16 %v507_v61, %v503_v27  ;;  %v510_v3 = vpack.c.bf16 %v506_v63, %v502_v62  ;;  %v509_v6 = vsel %vm493_vm8, %v485_v58, %v501_v60  ;;  %v2151_v55 = vld [vmem:[#allocation5 + $0x244] ss:$12 sps:$4 sm:$0xff]   ;;  %v2149_v57 = vld [vmem:[#allocation5 + $0x240] ss:$12 sps:$4 sm:$0xff]   ;;  %v2154_v21 = vld [vmem:[#allocation5 + $0x25c] ss:$12 sps:$4 sm:$0xff]  }
 0x277   :  { %v513_v10 = vpack.c.bf16 %v509_v6, %v505_v7  ;;  %v484_v37 = vadd.f32 %v473_v46, %v460_v45  ;;  %v480_v50 = vadd.f32 %v473_v46, %v456_v25  ;;  %v2152_v59 = vld [vmem:[#allocation5 + $0x258] ss:$12 sps:$4 sm:$0xff]   ;;  %v2157_v20 = vld [vmem:[#allocation5 + $0x274] ss:$12 sps:$4 sm:$0xff]   ;;  %v2155_v60 = vld [vmem:[#allocation5 + $0x270] ss:$12 sps:$4 sm:$0xff]  }
 0x278   :  { %1198 = vmatprep.mubr.bf16.mxu0 %v511_v1  ;;  %1284 = vmatprep.mubr.bf16.mxu1 %v511_v1  ;;  %v2160_v27 = vld [vmem:[#allocation5 + $0x28c] ss:$12 sps:$4 sm:$0xff]   ;;  %v2158_v61 = vld [vmem:[#allocation5 + $0x288] ss:$12 sps:$4 sm:$0xff]   ;;  %v2163_v62 = vld [vmem:[#allocation5 + $0x2a4] ss:$12 sps:$4 sm:$0xff]  }
 0x279   :  { %1199 = vmatmul.mubr.bf16.vlgmr.msra.gmra.mrb[4].mxu0 %v510_v3  ;;  %1285 = vmatmul.mubr.bf16.vlgmr.msra.gmra.mrb[4].mxu1 %v510_v3  ;;  %v500_v52 = vmul.f32 0.01, %v484_v37  ;;  %vm492_vm9 = vcmp.ge.f32.partialorder %v484_v37, 0.0  ;;  %v496_v54 = vmul.f32 0.01, %v480_v50  ;;  %vm488_vm10 = vcmp.ge.f32.partialorder %v480_v50, 0.0 }
 0x27a   :  { %1210 = vmatpush1.bf16.msra.mxu0 %v2109_v2  ;;  %1929 = vmatpush3.bf16.msra.mxu1 %v2113_v5  ;;  %v2161_v63 = vld [vmem:[#allocation5 + $0x2a0] ss:$12 sps:$4 sm:$0xff]   ;;  %v2166_v1 = vld [vmem:[#allocation5 + $0x2bc] ss:$12 sps:$4 sm:$0xff]   ;;  %v2164_v2 = vld [vmem:[#allocation5 + $0x2b8] ss:$12 sps:$4 sm:$0xff]  }
 0x27b   :  { %1241 = vmatprep.mubr.bf16.mxu0 %v513_v10  ;;  %1325 = vmatprep.mubr.bf16.mxu1 %v513_v10  ;;  %v508_v56 = vsel %vm492_vm9, %v484_v37, %v500_v52  ;;  %v504_v26 = vsel %vm488_vm10, %v480_v50, %v496_v54  ;;  %v2169_v3 = vld [vmem:[#allocation5 + $0x2d4] ss:$12 sps:$4 sm:$0xff]   ;;  %v2167_v5 = vld [vmem:[#allocation5 + $0x2d0] ss:$12 sps:$4 sm:$0xff]   ;;  %v2172_v6 = vld [vmem:[#allocation5 + $0x2ec] ss:$12 sps:$4 sm:$0xff]  }
 0x27c   :  { %1211 = vmatprep.subr.bf16.mxu0 %v2116_v8  ;;  %1930 = vmatprep.subr.bf16.mxu1 %v2117_v9  ;;  %v512_v58 = vpack.c.bf16 %v508_v56, %v504_v26  ;;  %v2170_v7 = vld [vmem:[#allocation5 + $0x2e8] ss:$12 sps:$4 sm:$0xff]   ;;  %vm1755_vm3 = vcmask 122880  }
 0x27e   :  { %1212 = vmatpush1.bf16.msra.mxu0 %v2114_v15  ;;  %1931 = vmatpush3.bf16.msra.mxu1 %v2118_v16 }
 0x27f   :  { %1213 = vmatprep.subr.bf16.mxu0 %v2121_v17  ;;  %1932 = vmatprep.subr.bf16.mxu1 %v2122_v18  ;;  %v644_v18 = vsub.s32 4, %v2429_v4 }
 0x281   :  { %v645_v41 = vrot.slane %v2446_v22, %v644_v18  ;;  %v649_v37 = vrot.slane %v2448_v23, %v644_v18 }
 0x282   :  { %1214 = vmatpush1.bf16.msra.mxu0 %v2119_v19  ;;  %1933 = vmatpush3.bf16.msra.mxu1 %v2123_v28  ;;  %v653_v19 = vrot.slane %v2450_v24, %v644_v18  ;;  %v2179_v18 = vld [vmem:[#allocation7 + $0x58] sm:$0xff]  }
 0x283   :  { %1215 = vmatprep.subr.bf16.mxu0 %v2126_v29  ;;  %1934 = vmatprep.subr.bf16.mxu1 %v2127_v30 }
 0x286   :  { %1216 = vmatpush1.bf16.msra.mxu0 %v2124_v31  ;;  %1935 = vmatpush3.bf16.msra.mxu1 %v2128_v32 }
 0x287   :  { %1217 = vmatprep.subr.bf16.mxu0 %v2131_v35  ;;  %1936 = vmatprep.subr.bf16.mxu1 %v2132_v36 }
 0x28a   :  { %1218 = vmatpush1.bf16.msra.mxu0 %v2129_v39  ;;  %1937 = vmatpush3.bf16.msra.mxu1 %v2133_v40 }
 0x28b   :  { %1219 = vmatprep.subr.bf16.mxu0 %v2136_v43  ;;  %1938 = vmatprep.subr.bf16.mxu1 %v2137_v44 }
 0x28e   :  { %1220 = vmatpush1.bf16.msra.mxu0 %v2134_v47  ;;  %1939 = vmatpush3.bf16.msra.mxu1 %v2138_v48 }
 0x28f   :  { %1221 = vmatprep.subr.bf16.mxu0 %v2141_v12  ;;  %1940 = vmatprep.subr.bf16.mxu1 %v2142_v13  ;;  %v2173_v12 = vld [vmem:[#allocation7 + $0x40] sm:$0xff]  }
 0x290   :  { %v2174_v13 = vld [vmem:[#allocation7] sm:$0xff]  }
 0x292   :  { %1222 = vmatpush1.bf16.msra.mxu0 %v2139_v49  ;;  %1941 = vmatpush3.bf16.msra.mxu1 %v2143_v11  ;;  %v1354_v49 = vsub.s32 7, %v2429_v4 }
 0x293   :  { %1223 = vmatprep.subr.bf16.mxu0 %v2146_v51  ;;  %1942 = vmatprep.subr.bf16.mxu1 %v2147_v14 }
 0x294   :  { %v1355_v50 = vrot.slane %v2446_v22, %v1354_v49  ;;  %v1359_v51 = vrot.slane %v2448_v23, %v1354_v49  ;;  %v1363_v52 = vrot.slane %v2450_v24, %v1354_v49 }
 0x296   :  { %1224 = vmatpush1.bf16.msra.mxu0 %v2144_v53  ;;  %1943 = vmatpush3.bf16.msra.mxu1 %v2148_v34 }
 0x297   :  { %1225 = vmatprep.subr.bf16.mxu0 %v2151_v55  ;;  %1950 = vmatprep.subr.bf16.mxu1 %v2173_v12 }
 0x299   :  { %1326 = vmatmul.mubr.bf16.vlgmr.msra.gmra.mrb[8].mxu1 %v512_v58 }
 0x29a   :  { %1226 = vmatpush1.bf16.msra.mxu0 %v2149_v57  ;;  %1951 = vmatpush3.bf16.msra.mxu1 %v2174_v13 }
 0x29b   :  { %1227 = vmatprep.subr.bf16.mxu0 %v2154_v21 }
 0x29e   :  { %1228 = vmatpush1.bf16.msra.mxu0 %v2152_v59 }
 0x29f   :  { %1229 = vmatprep.subr.bf16.mxu0 %v2157_v20 }
 0x2a2   :  { %1230 = vmatpush1.bf16.msra.mxu0 %v2155_v60 }
 0x2a3   :  { %1231 = vmatprep.subr.bf16.mxu0 %v2160_v27 }
 0x2a6   :  { %1232 = vmatpush1.bf16.msra.mxu0 %v2158_v61 }
 0x2a7   :  { %1233 = vmatprep.subr.bf16.mxu0 %v2163_v62 }
 0x2aa   :  { %1234 = vmatpush1.bf16.msra.mxu0 %v2161_v63 }
 0x2ab   :  { %1235 = vmatprep.subr.bf16.mxu0 %v2166_v1 }
 0x2ae   :  { %1236 = vmatpush1.bf16.msra.mxu0 %v2164_v2 }
 0x2af   :  { %1237 = vmatprep.subr.bf16.mxu0 %v2169_v3 }
 0x2b2   :  { %1238 = vmatpush1.bf16.msra.mxu0 %v2167_v5 }
 0x2b3   :  { %1239 = vmatprep.subr.bf16.mxu0 %v2172_v6 }
 0x2b6   :  { %1240 = vmatpush1.bf16.msra.mxu0 %v2170_v7 }
 0x2b9   :  { %1242 = vmatmul.mubr.bf16.vlgmr.msra.gmra.mrb[4].mxu0 %v512_v58 }
 0x34c   :  { %v1922_v8 = vpop.f32.mrb[4].mxu1 }
 0x34d   :  { %v1923_v9 = vpop.f32.mrb[5].mxu1 }
 0x34e   :  { %v1924_v10 = vadd.f32 %v1923_v9, %v1922_v8  ;;  %v1925_v15 = vpop.f32.mrb[6].mxu1 }
 0x34f   :  { %v1926_v16 = vpop.f32.mrb[7].mxu1 }
 0x350   :  { %v1927_v17 = vadd.f32 %v1926_v16, %v1925_v15  ;;  %v1287_v30 = vadd.f32 %v1924_v10, %v653_v19  ;;  %v2175_v10 = vld [vmem:[#allocation7 + $0x48] sm:$0xff]   ;;  %v2177_v16 = vld [vmem:[#allocation7 + $0x50] sm:$0xff]  }
 0x351   :  { %v2176_v15 = vld [vmem:[#allocation7 + $0x8] sm:$0xff]   ;;  %1952 = vmatprep.subr.bf16.mxu1 %v2175_v10 }
 0x352   :  { %v1290_v36 = vadd.f32 %v1927_v17, %v653_v19  ;;  %1953 = vmatpush3.bf16.msra.mxu1 %v2176_v15  ;;  %v2178_v17 = vld [vmem:[#allocation7 + $0x10] sm:$0xff]   ;;  %v2180_v19 = vld [vmem:[#allocation7 + $0x18] sm:$0xff]  }
 0x353   :  { %1954 = vmatprep.subr.bf16.mxu1 %v2177_v16  ;;  %v2194_v16 = vld [vmem:[#allocation7 + $0xa8] sm:$0xff]  }
 0x356   :  { %1955 = vmatpush3.bf16.msra.mxu1 %v2178_v17 }
 0x357   :  { %1956 = vmatprep.subr.bf16.mxu1 %v2179_v18 }
 0x35a   :  { %1957 = vmatpush3.bf16.msra.mxu1 %v2180_v19 }
 0x36c   :  { %v1944_v28 = vpop.f32.mrb[8].mxu1 }
 0x36d   :  { %v1945_v29 = vpop.f32.mrb[9].mxu1 }
 0x36e   :  { %v1946_v31 = vadd.f32 %v1945_v29, %v1944_v28  ;;  %v1947_v32 = vpop.f32.mrb[10].mxu1  ;;  %v2181_v28 = vld [vmem:[#allocation7 + $0x60] sm:$0xff]  }
 0x36f   :  { %v1948_v35 = vpop.f32.mrb[11].mxu1  ;;  %v2182_v29 = vld [vmem:[#allocation7 + $0x20] sm:$0xff]   ;;  %1958 = vmatprep.subr.bf16.mxu1 %v2181_v28  ;;  %v2195_v28 = vld [vmem:[#allocation7 + $0xb0] sm:$0xff]  }
 0x370   :  { %v1328_v38 = vadd.f32 %v1946_v31, %v1287_v30  ;;  %v1949_v39 = vadd.f32 %v1948_v35, %v1947_v32  ;;  %v2183_v30 = vld [vmem:[#allocation7 + $0x68] sm:$0xff]   ;;  %1959 = vmatpush3.bf16.msra.mxu1 %v2182_v29  ;;  %v2185_v32 = vld [vmem:[#allocation7 + $0x70] sm:$0xff]  }
 0x371   :  { %v2184_v31 = vld [vmem:[#allocation7 + $0x28] sm:$0xff]   ;;  %1960 = vmatprep.subr.bf16.mxu1 %v2183_v30  ;;  %v2186_v35 = vld [vmem:[#allocation7 + $0x30] sm:$0xff]  }
 0x372   :  { %v1331_v40 = vadd.f32 %v1949_v39, %v1290_v36  ;;  %v2187_v36 = vld [vmem:[#allocation7 + $0x78] sm:$0xff]   ;;  %v2337_v39 = vmov 0.0  }
 0x374   :  { %1961 = vmatpush3.bf16.msra.mxu1 %v2184_v31 }
 0x375   :  { %1962 = vmatprep.subr.bf16.mxu1 %v2185_v32 }
 0x378   :  { %1963 = vmatpush3.bf16.msra.mxu1 %v2186_v35 }
 0x379   :  { %1964 = vmatprep.subr.bf16.mxu1 %v2187_v36 }
 0x38c   :  { %v1243_v42 = vpop.f32.mrb[4].mxu0 }
 0x38d   :  { %v2001_v43 = vadd.f32 %v1243_v42, %v645_v41  ;;  %v1245_v44 = vpop.f32.mrb[5].mxu0 }
 0x38e   :  { %v1247_v45 = vpop.f32.mrb[6].mxu0  ;;  %v2002_v11 = vadd.f32 %v1245_v44, %v649_v37 }
 0x38f   :  { %v1334_v47 = vmul.f32 0.0033333334, %v2001_v43  ;;  %v2003_v48 = vadd.f32 %v1247_v45, %v645_v41  ;;  %v1249_v25 = vpop.f32.mrb[7].mxu0 }
 0x390   :  { %v2004_v53 = vadd.f32 %v1249_v25, %v649_v37 }
 0x391   :  { %v1335_v46 = vmul.f32 0.0033333334, %v2003_v48  ;;  %1338 = vperm.xlu0 %2034, %v1334_v47   ;;  %v1398_v47 = vsub.s32 5, %v2429_v4 }
 0x393   :  { %1343 = vperm.xlu1 %2035, %v1335_v46   ;;  %v1403_v25 = vrot.slane %v2448_v23, %v1398_v47  ;;  %v1399_v46 = vrot.slane %v2446_v22, %v1398_v47  ;;  %v1407_v10 = vrot.slane %v2450_v24, %v1398_v47 }
 0x410   :  { %v1339_v14 = vpop.permute.xlu0 %1338 }
 0x411   :  { %v2551_v34 = vsub.f32 %v2001_v43, %v1339_v14  ;;  %v2553_v54 = vsub.f32 %v2002_v11, %v1339_v14  ;;  %v2555_v55 = vsub.f32 %v1328_v38, %v1339_v14  ;;  %v2188_v38 = vld [vmem:[#allocation7 + $0x38] sm:$0xff]  }
 0x412   :  { %v1344_v56 = vpop.permute.xlu1 %1343  ;;  %1965 = vmatpush3.bf16.msra.mxu1 %v2188_v38 }
 0x413   :  { %v1364_v57 = vmul.f32 %v1355_v50, %v2551_v34  ;;  %v1365_v26 = vmul.f32 %v1359_v51, %v2553_v54  ;;  %v2559_v58 = vsub.f32 %v2003_v48, %v1344_v56  ;;  %v2561_v21 = vsub.f32 %v2004_v53, %v1344_v56  ;;  %1981 = vmatprep.subr.bf16.mxu1 %v2337_v39 }
 0x414   :  { %v2563_v59 = vsub.f32 %v1331_v40, %v1344_v56  ;;  %v1366_v20 = vmul.f32 %v1363_v52, %v2555_v55  ;;  %v1416_v48 = vsub.s32 6, %v2429_v4 }
 0x415   :  { %v1367_v60 = vmul.f32 %v1355_v50, %v2559_v58  ;;  %v1368_v27 = vmul.f32 %v1359_v51, %v2561_v21  ;;  %v1370_v61 = vmul.f32 %v1364_v57, %v1364_v57  ;;  %v1371_v62 = vmul.f32 %v1365_v26, %v1365_v26 }
 0x416   :  { %v1369_v63 = vmul.f32 %v1363_v52, %v2563_v59  ;;  %v1372_v1 = vmul.f32 %v1366_v20, %v1366_v20  ;;  %v1421_v37 = vrot.slane %v2448_v23, %v1416_v48  ;;  %v1417_v11 = vrot.slane %v2446_v22, %v1416_v48 }
 0x417   :  { %v1376_v2 = vadd.f32 %v1371_v62, %v1370_v61  ;;  %v1373_v3 = vmul.f32 %v1367_v60, %v1367_v60  ;;  %v1374_v5 = vmul.f32 %v1368_v27, %v1368_v27  ;;  %v1425_v18 = vrot.slane %v2450_v24, %v1416_v48 }
 0x418   :  { %v1375_v7 = vmul.f32 %v1369_v63, %v1369_v63 }
 0x419   :  { %v1377_v6 = vadd.f32 %v1376_v2, %v1372_v1  ;;  %v1380_v8 = vadd.f32 %v1374_v5, %v1373_v3  ;;  %v2189_v1 = vld [vmem:[#allocation7 + $0x80] sm:$0xff]   ;;  %v2190_v3 = vld [vmem:[#allocation7 + $0x88] sm:$0xff]   ;;  %v2191_v5 = vld [vmem:[#allocation7 + $0x90] sm:$0xff]  }
 0x41b   :  { %1378 = vadd.xlane.f32.xlu0 %v1377_v6  ;;  %v1381_v9 = vadd.f32 %v1380_v8, %v1375_v7  ;;  %v2192_v6 = vld [vmem:[#allocation7 + $0x98] sm:$0xff]   ;;  %v2193_v8 = vld [vmem:[#allocation7 + $0xa0] sm:$0xff]  }
 0x41d   :  { %1382 = vadd.xlane.f32.xlu1 %v1381_v9 }
 0x4a8   :  { %v1379_v40 = vpop.xlane.xlu0 %1378 }
 0x4a9   :  { %v1384_v41 = vmul.f32 0.0033333334, %v1379_v40 }
 0x4aa   :  { %v1383_v42 = vpop.xlane.xlu1 %1382 }
 0x4ab   :  { %v1386_v43 = vadd.f32 1e-05, %v1384_v41  ;;  %v1385_v44 = vmul.f32 0.0033333334, %v1383_v42 }
 0x4ad   :  { %2201 = vrsqrt.f32 %v1386_v43  ;;  %v1387_v45 = vadd.f32 1e-05, %v1385_v44  ;;  %v87_v43 = vld [vmem:[#allocation8 + $0x20] sm:$0xff] }
 0x4ae   :  { %v1730_v44 = vrot.slane %v87_v43, %v2502_v33 }
 0x4af   :  { %2203 = vrsqrt.f32 %v1387_v45 }
 0x4b7   :  { %v2202_v12 = vpop.eup %2201 }
 0x4b8   :  { %v1391_v13 = vmul.f32 %v2202_v12, %v2553_v54  ;;  %v1390_v49 = vmul.f32 %v2202_v12, %v2551_v34  ;;  %v1392_v9 = vmul.f32 %v2202_v12, %v2555_v55  ;;  %v2196_v55 = vld [vmem:[#allocation7 + $0xb8] sm:$0xff]  }
 0x4b9   :  { %v2204_v50 = vpop.eup %2203 }
 0x4ba   :  { %v1394_v51 = vmul.f32 %v2204_v50, %v2561_v21  ;;  %v1409_v14 = vmul.f32 %v1403_v25, %v1391_v13  ;;  %v1393_v52 = vmul.f32 %v2204_v50, %v2559_v58  ;;  %v1408_v53 = vmul.f32 %v1399_v46, %v1390_v49 }
 0x4bb   :  { %v1395_v7 = vmul.f32 %v2204_v50, %v2563_v59  ;;  %v1410_v17 = vmul.f32 %v1407_v10, %v1392_v9 }
 0x4bc   :  { %v1412_v56 = vmul.f32 %v1403_v25, %v1394_v51  ;;  %v1427_v57 = vadd.f32 %v1421_v37, %v1409_v14  ;;  %v1411_v26 = vmul.f32 %v1399_v46, %v1393_v52  ;;  %v1426_v20 = vadd.f32 %v1417_v11, %v1408_v53 }
 0x4bd   :  { %v1413_v15 = vmul.f32 %v1407_v10, %v1395_v7  ;;  %v1428_v59 = vadd.f32 %v1425_v18, %v1410_v17 }
 0x4be   :  { %v1430_v60 = vadd.f32 %v1421_v37, %v1412_v56  ;;  %v1439_v27 = vmul.f32 0.01, %v1427_v57  ;;  %v1429_v54 = vadd.f32 %v1417_v11, %v1411_v26  ;;  %vm1433_vm11 = vcmp.ge.f32.partialorder %v1427_v57, 0.0 }
 0x4bf   :  { %v1438_v23 = vmul.f32 0.01, %v1426_v20  ;;  %vm1432_vm13 = vcmp.ge.f32.partialorder %v1426_v20, 0.0  ;;  %v1431_v19 = vadd.f32 %v1425_v18, %v1413_v15  ;;  %v1440_v30 = vmul.f32 0.01, %v1428_v59 }
 0x4c0   :  { %vm1436_vm12 = vcmp.ge.f32.partialorder %v1430_v60, 0.0  ;;  %v1442_v34 = vmul.f32 0.01, %v1430_v60  ;;  %vm1435_vm14 = vcmp.ge.f32.partialorder %v1429_v54, 0.0  ;;  %v1441_v22 = vmul.f32 0.01, %v1429_v54 }
 0x4c1   :  { %v1445_v61 = vsel %vm1433_vm11, %v1427_v57, %v1439_v27  ;;  %v1444_v63 = vsel %vm1432_vm13, %v1426_v20, %v1438_v23  ;;  %v1443_v29 = vmul.f32 0.01, %v1431_v19  ;;  %vm1437_vm0 = vcmp.ge.f32.partialorder %v1431_v19, 0.0 }
 0x4c2   :  { %v1448_v21 = vsel %vm1436_vm12, %v1430_v60, %v1442_v34  ;;  %v1447_v58 = vsel %vm1435_vm14, %v1429_v54, %v1441_v22  ;;  %vm1434_vm1 = vcmp.ge.f32.partialorder %v1428_v59, 0.0  ;;  %v1742_v37 = vand.u32 127, %v107_v0 }
 0x4c3   :  { %v1451_v62 = vpack.c.bf16 %v1448_v21, %v1445_v61  ;;  %v1450_v2 = vpack.c.bf16 %v1447_v58, %v1444_v63  ;;  %v1449_v31 = vsel %vm1437_vm0, %v1431_v19, %v1443_v29  ;;  %v1446_v32 = vsel %vm1434_vm1, %v1428_v59, %v1440_v30 }
 0x4c4   :  { %v1452_v24 = vpack.c.bf16 %v1449_v31, %v1446_v32  ;;  %v1747_v49 = vadd.s32 4294967288, %v1742_v37  ;;  %v1745_v11 = vsub.s32 %v1742_v37, %v2429_v4 }
 0x4c5   :  { %1677 = vmatprep.mubr.bf16.mxu1 %v1451_v62 }
 0x4c6   :  { %1678 = vmatmul.mubr.bf16.vlgmr.msra.gmra.mrb[12].mxu1 %v1450_v2  ;;  %v1750_v50 = vsub.s32 %v1747_v49, %v2429_v4 }
 0x4c7   :  { %1982 = vmatpush3.bf16.msra.mxu1 %v2189_v1  ;;  %1997 = vmatprep.mubr.msk.bf16.mxu1 %vm2338_vm15, %v2337_v39 }
 0x4c8   :  { %1983 = vmatprep.subr.bf16.mxu1 %v2337_v39 }
 0x4cb   :  { %1984 = vmatpush3.bf16.msra.mxu1 %v2190_v3 }
 0x4cc   :  { %1985 = vmatprep.subr.bf16.mxu1 %v2337_v39 }
 0x4cf   :  { %1986 = vmatpush3.bf16.msra.mxu1 %v2191_v5 }
 0x4d0   :  { %1987 = vmatprep.subr.bf16.mxu1 %v2337_v39 }
 0x4d3   :  { %1988 = vmatpush3.bf16.msra.mxu1 %v2192_v6 }
 0x4d4   :  { %1989 = vmatprep.subr.bf16.mxu1 %v2337_v39 }
 0x4d7   :  { %1990 = vmatpush3.bf16.msra.mxu1 %v2193_v8 }
 0x4d8   :  { %1991 = vmatprep.subr.bf16.mxu1 %v2337_v39 }
 0x4db   :  { %1992 = vmatpush3.bf16.msra.mxu1 %v2194_v16 }
 0x4dc   :  { %1993 = vmatprep.subr.bf16.mxu1 %v2337_v39 }
 0x4df   :  { %1994 = vmatpush3.bf16.msra.mxu1 %v2195_v28 }
 0x4e0   :  { %1995 = vmatprep.subr.bf16.mxu1 %v2337_v39 }
 0x4e3   :  { %1996 = vmatpush3.bf16.msra.mxu1 %v2196_v55 }
 0x4e6   :  { %1998 = vmatmul.mubr.bf16.vlgmr.msra.gmra.mrb[16].mxu1 %v1452_v24 }
 0x599   :  { %v1966_v35 = vpop.f32.mrb[12].mxu1 }
 0x59a   :  { %v1967_v36 = vpop.f32.mrb[13].mxu1 }
 0x59b   :  { %v1968_v38 = vadd.f32 %v1967_v36, %v1966_v35  ;;  %v1969_v40 = vpop.f32.mrb[14].mxu1 }
 0x59c   :  { %v1970_v41 = vpop.f32.mrb[15].mxu1 }
 0x59d   :  { %v1971_v42 = vadd.f32 %v1970_v41, %v1969_v40 }
 0x5b9   :  { %v1720_v45 = vpop.f32.mrb[16].mxu1 }
 0x5ba   :  { %v1721_v47 = vadd.f32 %v1968_v38, %v1720_v45  ;;  %v1999_v48 = vpop.f32.mrb[17].mxu1 }
 0x5bb   :  { %v1723_v25 = vpop.f32.mrb[18].mxu1 }
 0x5bc   :  { %v1731_v39 = vadd.f32 %v1730_v44, %v1721_v47  ;;  %v1724_v46 = vadd.f32 %v1971_v42, %v1723_v25  ;;  %v2000_v12 = vpop.f32.mrb[19].mxu1 }
 0x5be   :  { %v1732_v13 = vadd.f32 %v1730_v44, %v1724_v46  ;;  %1736 = vperm.xlu0 %2034, %v1731_v39  }
 0x5c0   :  { %1739 = vperm.xlu1 %2035, %v1732_v13  }
 0x63d   :  { %v1737_v51 = vpop.permute.xlu0 %1736 }
 0x63e   :  { %v1746_v14 = vrot.slane %v1737_v51, %v1745_v11 }
 0x63f   :  { %v1740_v33 = vpop.permute.xlu1 %1739 }
 0x640   :  { %v1751_v52 = vrot.slane %v1740_v33, %v1750_v50 }
 0x642   :  { %v1753_v53 = vsel %vm1752_vm2, %v1751_v52, %v1746_v14 }
 0x643   :  { %1756 = vst.msk [vmem:[#allocation10] sm:$0x1] %vm1755_vm3, %v1753_v53 }
 0x644   :  { %2304 = shalt.err (!%p2301_p8)
}
 0x645   :  { %s2305_s2 = scalar_lea.hbm %s2615_s7, 16 }
 0x646   :  { %p2306_p9 = scmp.ne.s32.totalorder %s2615_s7, %s2305_s2  ;;  %p2309_p10 = scmp.lt.u32.totalorder %s2305_s2, %s2615_s7 }
 0x648   :  { %p2311_p11 = pnand %p2309_p10, %p2306_p9 }
 0x64a   :  { %2314 = shalt.err (!%p2311_p11)
}
 0x64b   :  { %1766 = dma.vmem_to_hbm [thread:$0]  %s1764_s10, 16, %s2615_s7, [#allocation4]  }
 0x64c   :  { %2321 = dma.done.wait [#allocation4], 16  }
 0x64d   :  { %2322 = vsyncadd [#allocation4], 4294967280 }
 0x64e   :  { %1770 = vsyncpa [#allocation3], 1 }
 0x64f   :  { %1771 = vsyncpa [#allocation6], 1 }
 0x650   :  { %1772 = vsyncpa [#allocation9], 1 }
 0x651   :  { %1773 = vsyncpa [#allocation4], 1 }

</bundles_post_ra>
